<compile_context>
chip_gen: v6e
topology: v6e:2x2x1
jax: 0.10.0
libtpu: 0.0.40
codegen_flags: <defaults>
</compile_context>

<pallas_src>
import functools

import jax
import jax.numpy as jnp
from jax.experimental import pallas as pl
from jax.experimental.pallas import tpu as pltpu

_VMEM_LIMIT = 48 * 1024 * 1024


def _round_up(v, m):
    return (v + m - 1) // m * m


# ---------------------------------------------------------------------------
# Kernel 1: fused feature transform + attention scores (lane-dense MXU work).
# ---------------------------------------------------------------------------
def _transform_kernel(x_ref, w_ref, ssrc_ref, sdst_ref,
                      hh_ref, asrc_ref, adst_ref):
    hh = jnp.dot(x_ref[...], w_ref[...], preferred_element_type=jnp.float32)
    hh_ref[...] = hh
    asrc_ref[...] = jnp.dot(hh, ssrc_ref[...], preferred_element_type=jnp.float32)
    adst_ref[...] = jnp.dot(hh, sdst_ref[...], preferred_element_type=jnp.float32)


# ---------------------------------------------------------------------------
# Kernel 2: masked attention softmax + aggregation over a tile of target rows.
# ---------------------------------------------------------------------------
def _attention_kernel(adj_ref, adst_ref, asrcT_ref, hh_ref, bias_ref, out_ref,
                      *, heads, f_out, concat, activation):
    # additive edge mask, built once per tile and reused for every head
    mask_add = jnp.where(adj_ref[...] > 0, 0.0, -1e9).astype(jnp.float32)
    hh = hh_ref[...]

    outs = []
    for h in range(heads):                        # static unroll; heads is small
        a_d = adst_ref[:, h:h + 1]                # [T, 1]
        a_s = asrcT_ref[h:h + 1, :]               # [1, N]  lane-major, no transpose
        e = a_d + a_s                             # [T, N]
        e = jnp.where(e > 0, e, 0.2 * e)          # LeakyReLU(0.2)
        e = e + mask_add                          # mask non-edges
        m = jnp.max(e, axis=-1, keepdims=True)
        p = jnp.exp(e - m)                        # masked entries underflow to 0
        s = jnp.sum(p, axis=-1, keepdims=True)    # [T, 1]
        out_h = jnp.dot(p, hh[:, h * f_out:(h + 1) * f_out],
                        preferred_element_type=jnp.float32)
        # deferred softmax normalization: scale the small [T, F_out] result
        outs.append(out_h * pl.reciprocal(s, approx=False))

    if concat:
        y = jnp.concatenate(outs, axis=-1)
    else:
        y = outs[0]
        for o in outs[1:]:
            y = y + o
        y = y * (1.0 / heads)

    y = y + bias_ref[...]
    if activation == "relu":
        y = jnp.maximum(y, 0.0)
    elif activation == "log_softmax":
        m2 = jnp.max(y, axis=-1, keepdims=True)
        y = y - (m2 + jnp.log(jnp.sum(jnp.exp(y - m2), axis=-1, keepdims=True)))
    out_ref[...] = y                              # single lane-dense store


# ---------------------------------------------------------------------------
# Layer wrapper
# ---------------------------------------------------------------------------
def gat_layer(x, adj_i8, w, a_src, a_dst, bias, *, concat, activation, tile):
    heads, f_in, f_out = w.shape
    n = x.shape[0]
    hf = heads * f_out
    out_dim = hf if concat else f_out
    grid = (n // tile,)

    # Fuse heads into one lane-dense weight [F_in, H*F_out]; fold attention
    # vectors into block-diagonal score matrices [H*F_out, H].
    w_fused = jnp.transpose(w, (1, 0, 2)).reshape(f_in, hf)
    eye = jnp.eye(heads, dtype=jnp.float32)
    s_src = (a_src[:, :, None] * eye[:, None, :]).reshape(hf, heads)
    s_dst = (a_dst[:, :, None] * eye[:, None, :]).reshape(hf, heads)

    hh, sc_src, sc_dst = pl.pallas_call(
        _transform_kernel,
        out_shape=(jax.ShapeDtypeStruct((n, hf), jnp.float32),
                   jax.ShapeDtypeStruct((n, heads), jnp.float32),
                   jax.ShapeDtypeStruct((n, heads), jnp.float32)),
        grid=grid,
        in_specs=[pl.BlockSpec((tile, f_in), lambda i: (i, 0)),
                  pl.BlockSpec((f_in, hf), lambda i: (0, 0)),
                  pl.BlockSpec((hf, heads), lambda i: (0, 0)),
                  pl.BlockSpec((hf, heads), lambda i: (0, 0))],
        out_specs=(pl.BlockSpec((tile, hf), lambda i: (i, 0)),
                   pl.BlockSpec((tile, heads), lambda i: (i, 0)),
                   pl.BlockSpec((tile, heads), lambda i: (i, 0))),
        compiler_params=pltpu.CompilerParams(
            dimension_semantics=("parallel",),
            vmem_limit_bytes=_VMEM_LIMIT),
        cost_estimate=pl.CostEstimate(
            flops=int(2 * n * f_in * hf + 4 * n * hf * heads),
            transcendentals=0,
            bytes_accessed=int(4 * (n * f_in + f_in * hf + n * hf + 2 * n * heads))),
    )(x, w_fused, s_src, s_dst)

    # single hoisted transpose to lane-major source scores [H, N]
    sc_srcT = jnp.transpose(sc_src)

    kernel = functools.partial(_attention_kernel, heads=heads, f_out=f_out,
                               concat=concat, activation=activation)
    return pl.pallas_call(
        kernel,
        out_shape=jax.ShapeDtypeStruct((n, out_dim), jnp.float32),
        grid=grid,
        in_specs=[pl.BlockSpec((tile, n), lambda i: (i, 0)),        # adj (int8)
                  pl.BlockSpec((tile, heads), lambda i: (i, 0)),    # dst scores
                  pl.BlockSpec((heads, n), lambda i: (0, 0)),       # src scores^T
                  pl.BlockSpec((n, hf), lambda i: (0, 0)),          # hh (all sources)
                  pl.BlockSpec((1, out_dim), lambda i: (0, 0))],    # bias
        out_specs=pl.BlockSpec((tile, out_dim), lambda i: (i, 0)),
        compiler_params=pltpu.CompilerParams(
            dimension_semantics=("parallel",),
            vmem_limit_bytes=_VMEM_LIMIT),
        cost_estimate=pl.CostEstimate(
            flops=int(2 * heads * n * n * f_out + 6 * heads * n * n),
            transcendentals=int(heads * n * n),
            bytes_accessed=int(n * n + 4 * (n * hf + 2 * n * heads + n * out_dim))),
    )(adj_i8, sc_dst, sc_srcT, hh, bias)


def gat_forward(x, adj, params, *, tile_t=256):
    """x: [N, F_in] node features; adj: [N, N] dense mask, adj[i, j]=1 iff j->i
    (self-loops included, matching PyG add_self_loops=True)."""
    n, f_in = x.shape
    n8 = _round_up(n, 8)
    if n8 <= tile_t:
        tile = n8
        n_pad = n8
    else:
        tile = tile_t
        n_pad = _round_up(n, tile_t)

    x_p = jnp.zeros((n_pad, f_in), jnp.float32).at[:n, :].set(x)
    adj_i8 = jnp.zeros((n_pad, n_pad), jnp.int8).at[:n, :n].set(
        (adj > 0).astype(jnp.int8))
    valid = (jnp.arange(n_pad) < n)[:, None]

    h = gat_layer(x_p, adj_i8, params["w1"], params["asrc1"], params["adst1"],
                  params["b1"], concat=True, activation="relu", tile=tile)
    h = jnp.where(valid, h, 0.0)   # keep pad rows inert for layer 2
    out = gat_layer(h, adj_i8, params["w2"], params["asrc2"], params["adst2"],
                    params["b2"], concat=False, activation="log_softmax",
                    tile=tile)
    return out[:n]


# -------- pure-JAX reference for a correctness check --------
def _ref_layer(x, adj, w, a_src, a_dst, bias, concat):
    heads, _, f_out = w.shape
    outs = []
    for h in range(heads):
        hh = x @ w[h]
        a_s = (hh * a_src[h][None, :]).sum(-1)
        a_d = (hh * a_dst[h][None, :]).sum(-1)
        e = a_d[:, None] + a_s[None, :]
        e = jnp.where(e > 0, e, 0.2 * e)
        e = jnp.where(adj > 0, e, -1e9)
        e = e - e.max(-1, keepdims=True)
        p = jnp.where(adj > 0, jnp.exp(e), 0.0)
        alpha = p / p.sum(-1, keepdims=True)
        outs.append(alpha @ hh)
    y = jnp.concatenate(outs, axis=-1) if concat else sum(outs) / heads
    return y + bias


def _ref_forward(x, adj, params):
    h = jax.nn.relu(_ref_layer(x, adj, params["w1"], params["asrc1"],
                               params["adst1"], params["b1"], True))
    o = _ref_layer(h, adj, params["w2"], params["asrc2"],
                   params["adst2"], params["b2"], False)
    return jax.nn.log_softmax(o, axis=1)


if __name__ == "__main__":
    N, E = 8, 16
    in_channels, hidden_channels, out_channels, heads = 16, 8, 4, 8

    key = jax.random.PRNGKey(0)
    ks = jax.random.split(key, 10)

    # node features and random graph (edge_index: row 0 = source, row 1 = target)
    x = jax.random.normal(ks[0], (N, in_channels), dtype=jnp.float32)
    src = jax.random.randint(ks[1], (E,), 0, N)
    tgt = jax.random.randint(ks[2], (E,), 0, N)
    edge_index = jnp.stack([src, tgt])  # [2, E]

    # dense mask adj[i, j] = 1 iff edge j -> i, plus self-loops (PyG default)
    adj = jnp.zeros((N, N), jnp.float32).at[tgt, src].set(1.0)
    adj = jnp.maximum(adj, jnp.eye(N, dtype=jnp.float32))

    def glorot(k, shape):
        fan = shape[-2] + shape[-1]
        return jax.random.uniform(k, shape, jnp.float32,
                                  -jnp.sqrt(6.0 / fan), jnp.sqrt(6.0 / fan))

    params = {
        "w1": glorot(ks[3], (heads, in_channels, hidden_channels)),
        "asrc1": 0.1 * jax.random.normal(ks[4], (heads, hidden_channels), jnp.float32),
        "adst1": 0.1 * jax.random.normal(ks[5], (heads, hidden_channels), jnp.float32),
        "b1": jnp.zeros((1, heads * hidden_channels), jnp.float32),
        "w2": glorot(ks[6], (1, heads * hidden_channels, out_channels)),
        "asrc2": 0.1 * jax.random.normal(ks[7], (1, out_channels), jnp.float32),
        "adst2": 0.1 * jax.random.normal(ks[8], (1, out_channels), jnp.float32),
        "b2": jnp.zeros((1, out_channels), jnp.float32),
    }

    out = gat_forward(x, adj, params)
    out = jax.block_until_ready(out)

    ref = _ref_forward(x, adj, params)
    assert out.shape == (N, out_channels)
    assert jnp.allclose(out, ref, atol=1e-4, rtol=1e-4)

    print("KERNEL_OK")
</pallas_src>

<mosaic_0001>
module attributes {stable_mosaic.version = 11 : i64} {
  func.func @_transform_kernel(%arg0: i32, %arg1: memref<8x16xf32, #tpu.memory_space<vmem>>, %arg2: memref<16x64xf32, #tpu.memory_space<vmem>>, %arg3: memref<64x8xf32, #tpu.memory_space<vmem>>, %arg4: memref<64x8xf32, #tpu.memory_space<vmem>>, %arg5: memref<8x64xf32, #tpu.memory_space<vmem>>, %arg6: memref<8x8xf32, #tpu.memory_space<vmem>>, %arg7: memref<8x8xf32, #tpu.memory_space<vmem>>) attributes {dimension_semantics = [#tpu.dimension_semantics<parallel>], iteration_bounds = array<i64: 1>, scalar_prefetch = 0 : i64, scratch_operands = 0 : i64, tpu.core_type = #tpu.core_type<tc>, window_params = [{transform_indices = @transform_0, window_bounds = array<i64: 8, 16>}, {pipeline_mode = #tpu.pipeline_mode<synchronous>, transform_indices = @transform_1, window_bounds = array<i64: 16, 64>}, {pipeline_mode = #tpu.pipeline_mode<synchronous>, transform_indices = @transform_2, window_bounds = array<i64: 64, 8>}, {pipeline_mode = #tpu.pipeline_mode<synchronous>, transform_indices = @transform_3, window_bounds = array<i64: 64, 8>}, {transform_indices = @transform_4, window_bounds = array<i64: 8, 64>}, {transform_indices = @transform_5, window_bounds = array<i64: 8, 8>}, {transform_indices = @transform_6, window_bounds = array<i64: 8, 8>}]} {
    %c0 = arith.constant 0 : index
    %c0_0 = arith.constant 0 : index
    %0 = vector.load %arg1[%c0, %c0_0] : memref<8x16xf32, #tpu.memory_space<vmem>>, vector<8x16xf32>
    %c0_1 = arith.constant 0 : index
    %c0_2 = arith.constant 0 : index
    %1 = vector.load %arg2[%c0_1, %c0_2] : memref<16x64xf32, #tpu.memory_space<vmem>>, vector<16x64xf32>
    %cst = arith.constant dense<0.000000e+00> : vector<8x64xf32>
    %2 = tpu.matmul %0, %1, %cst {dimension_numbers = #tpu.dot_dimension_numbers<[1], [0], [0], [1], [0, 0, 1, 1], [], []>} : vector<8x16xf32>, vector<16x64xf32>, vector<8x64xf32> -> vector<8x64xf32>
    %c0_3 = arith.constant 0 : index
    %c0_4 = arith.constant 0 : index
    %3 = vector.load %arg5[%c0_3, %c0_4] : memref<8x64xf32, #tpu.memory_space<vmem>>, vector<8x64xf32>
    tpu.vector_store %arg5[%c0_3, %c0_4], %2 {strides = array<i32>} : memref<8x64xf32, #tpu.memory_space<vmem>>, vector<8x64xf32>,
    %c0_5 = arith.constant 0 : index
    %c0_6 = arith.constant 0 : index
    %4 = vector.load %arg3[%c0_5, %c0_6] : memref<64x8xf32, #tpu.memory_space<vmem>>, vector<64x8xf32>
    %cst_7 = arith.constant dense<0.000000e+00> : vector<8x8xf32>
    %5 = tpu.matmul %2, %4, %cst_7 {dimension_numbers = #tpu.dot_dimension_numbers<[1], [0], [0], [1], [0, 0, 1, 1], [], []>} : vector<8x64xf32>, vector<64x8xf32>, vector<8x8xf32> -> vector<8x8xf32>
    %c0_8 = arith.constant 0 : index
    %c0_9 = arith.constant 0 : index
    %6 = vector.load %arg6[%c0_8, %c0_9] : memref<8x8xf32, #tpu.memory_space<vmem>>, vector<8x8xf32>
    tpu.vector_store %arg6[%c0_8, %c0_9], %5 {strides = array<i32>} : memref<8x8xf32, #tpu.memory_space<vmem>>, vector<8x8xf32>,
    %c0_10 = arith.constant 0 : index
    %c0_11 = arith.constant 0 : index
    %7 = vector.load %arg4[%c0_10, %c0_11] : memref<64x8xf32, #tpu.memory_space<vmem>>, vector<64x8xf32>
    %cst_12 = arith.constant dense<0.000000e+00> : vector<8x8xf32>
    %8 = tpu.matmul %2, %7, %cst_12 {dimension_numbers = #tpu.dot_dimension_numbers<[1], [0], [0], [1], [0, 0, 1, 1], [], []>} : vector<8x64xf32>, vector<64x8xf32>, vector<8x8xf32> -> vector<8x8xf32>
    %c0_13 = arith.constant 0 : index
    %c0_14 = arith.constant 0 : index
    %9 = vector.load %arg7[%c0_13, %c0_14] : memref<8x8xf32, #tpu.memory_space<vmem>>, vector<8x8xf32>
    tpu.vector_store %arg7[%c0_13, %c0_14], %8 {strides = array<i32>} : memref<8x8xf32, #tpu.memory_space<vmem>>, vector<8x8xf32>,
    return
  }
  func.func @transform_0(%arg0: i32) -> (i32, i32) {
    %c0_i32 = arith.constant 0 : i32
    %c0_i32_0 = arith.constant 0 : i32
    return %arg0, %c0_i32 : i32, i32
  }
  func.func @transform_1(%arg0: i32) -> (i32, i32) {
    %c0_i32 = arith.constant 0 : i32
    %c0_i32_0 = arith.constant 0 : i32
    %c0_i32_1 = arith.constant 0 : i32
    return %c0_i32, %c0_i32_0 : i32, i32
  }
  func.func @transform_2(%arg0: i32) -> (i32, i32) {
    %c0_i32 = arith.constant 0 : i32
    %c0_i32_0 = arith.constant 0 : i32
    %c0_i32_1 = arith.constant 0 : i32
    return %c0_i32, %c0_i32_0 : i32, i32
  }
  func.func @transform_3(%arg0: i32) -> (i32, i32) {
    %c0_i32 = arith.constant 0 : i32
    %c0_i32_0 = arith.constant 0 : i32
    %c0_i32_1 = arith.constant 0 : i32
    return %c0_i32, %c0_i32_0 : i32, i32
  }
  func.func @transform_4(%arg0: i32) -> (i32, i32) {
    %c0_i32 = arith.constant 0 : i32
    %c0_i32_0 = arith.constant 0 : i32
    return %arg0, %c0_i32 : i32, i32
  }
  func.func @transform_5(%arg0: i32) -> (i32, i32) {
    %c0_i32 = arith.constant 0 : i32
    %c0_i32_0 = arith.constant 0 : i32
    return %arg0, %c0_i32 : i32, i32
  }
  func.func @transform_6(%arg0: i32) -> (i32, i32) {
    %c0_i32 = arith.constant 0 : i32
    %c0_i32_0 = arith.constant 0 : i32
    return %arg0, %c0_i32 : i32, i32
  }
}

</mosaic_0001>

<bundles_post_ra>
// kernel: tpu_custom_call.1
= control target key start
LH: loop header
LB: loop body
LE: loop exit
PB: predicated region body
PF: predicated region fallthrough
CT: control target
= control target key end

     0   :  { %12 = vsyncpa [#allocation3], 0  ;;  %v442_v1 = vmov 0.0   ;;  %vm443_vm0 = vmmov 0   ;;  %vm25_vm1 = vcmask 130048   ;;  %s551_s0 = inlined_call_operand.vmem [shape: f32[8,16], index: 0, kind: input, shape index: {}]   ;;  %s552_s1 = inlined_call_operand.vmem [shape: f32[16,64], index: 1, kind: input, shape index: {}]   ;;  %s553_s2 = inlined_call_operand.vmem [shape: f32[64,8], index: 2, kind: input, shape index: {}]   ;;  %s554_s3 = inlined_call_operand.vmem [shape: f32[64,8], index: 3, kind: input, shape index: {}]   ;;  %s555_s4 = inlined_call_operand.hbm [shape: f32[8,64], index: 4, kind: output, shape index: {0}]   ;;  %s556_s5 = inlined_call_operand.hbm [shape: f32[8,8], index: 5, kind: output, shape index: {1}]   ;;  %s557_s6 = inlined_call_operand.hbm [shape: f32[8,8], index: 6, kind: output, shape index: {2}]  }
   0x1   :  { %v24_v0 = vld [vmem:[%s552_s1 + $0x8] sm:$0xff]  ;;  %328 = vmatprep.subr.mxu0 %v442_v1  ;;  %v23_v2 = vld [vmem:[%s552_s1] sm:$0xff]  ;;  %332 = vmatprep.mubr.msk.f32.mxu0 %vm443_vm0, %v442_v1  ;;  %v108_v3 = vld [vmem:[%s553_s2 + $0x38] sm:$0xff] }
   0x2   :  { %329 = vmatpush3.msra.mxu0 %v24_v0  ;;  %v22_v4 = vld [vmem:[%s551_s0] sm:$0xff]  ;;  %335 = vmatprep.subr.mxu1 %v442_v1  ;;  %v191_v5 = vld [vmem:[%s554_s3 + $0x38] sm:$0xff]  ;;  %v107_v6 = vld [vmem:[%s553_s2 + $0x30] sm:$0xff] }
   0x3   :  { %330 = vmatprep.subr.mxu0 %v442_v1  ;;  %336 = vmatpush3.msra.mxu1 %v108_v3  ;;  %v190_v7 = vld [vmem:[%s554_s3 + $0x30] sm:$0xff]  ;;  %v106_v8 = vld [vmem:[%s553_s2 + $0x28] sm:$0xff] }
   0x4   :  { %331 = vmatpush3.msra.mxu0 %v23_v2  ;;  %337 = vmatprep.subr.mxu1 %v442_v1 }
   0x5   :  { %333 = vmatmul.mubr.msk.f32.vlgmr.msra.gmra.mxu0 %vm25_vm1, %v22_v4  ;;  %354 = vmatprep.subr.mxu0 %v442_v1 }
   0x6   :  { %13 = vsyncpa [#allocation5], 0  ;;  %355 = vmatpush3.msra.mxu0 %v191_v5  ;;  %338 = vmatpush3.msra.mxu1 %v107_v6  ;;  %v189_v9 = vld [vmem:[%s554_s3 + $0x28] sm:$0xff]  ;;  %v105_v10 = vld [vmem:[%s553_s2 + $0x20] sm:$0xff]  ;;  %vm99_vm2 = vcmask 523264   ;;  %s444_s8 = smov [#allocation2]  }
   0x7   :  { %356 = vmatprep.subr.mxu0 %v442_v1  ;;  %339 = vmatprep.subr.mxu1 %v442_v1  ;;  %v188_v11 = vld [vmem:[%s554_s3 + $0x20] sm:$0xff]  ;;  %v104_v12 = vld [vmem:[%s553_s2 + $0x18] sm:$0xff]  ;;  %v103_v14 = vld [vmem:[%s553_s2 + $0x10] sm:$0xff]  ;;  %s269_s9 = sshll.u32 %s444_s8, 4  ;;  %s270_s9 = int_to_ptr.vmem [resolvable:$true] %s269_s9 }
   0x8   :  { %357 = vmatpush3.msra.mxu0 %v190_v7  ;;  %340 = vmatpush3.msra.mxu1 %v106_v8  ;;  %v187_v13 = vld [vmem:[%s554_s3 + $0x18] sm:$0xff]  ;;  %v186_v15 = vld [vmem:[%s554_s3 + $0x10] sm:$0xff]  ;;  %v102_v16 = vld [vmem:[%s553_s2 + $0x8] sm:$0xff]  ;;  %s378_s0 = scalar_lea.vmem %s270_s9, 128  ;;  %p383_p1 = scmp.lt.s32.totalorder %s270_s9, %s270_s9 }
   0x9   :  { %358 = vmatprep.subr.mxu0 %v442_v1  ;;  %341 = vmatprep.subr.mxu1 %v442_v1  ;;  %v185_v17 = vld [vmem:[%s554_s3 + $0x8] sm:$0xff]  ;;  %v101_v18 = vld [vmem:[%s553_s2] sm:$0xff]  ;;  %p379_p0 = scmp.ne.s32.totalorder %s270_s9, %s378_s0  ;;  %p384_p2 = scmp.lt.s32.totalorder %s378_s0, %s378_s0 }
   0xa   :  { %359 = vmatpush3.msra.mxu0 %v189_v9  ;;  %342 = vmatpush3.msra.mxu1 %v105_v10  ;;  %v184_v19 = vld [vmem:[%s554_s3] sm:$0xff] }
   0xb   :  { %360 = vmatprep.subr.mxu0 %v442_v1  ;;  %343 = vmatprep.subr.mxu1 %v442_v1  ;;  %p385_p3 = por %p384_p2, %p383_p1 }
   0xc   :  { %361 = vmatpush3.msra.mxu0 %v188_v11  ;;  %344 = vmatpush3.msra.mxu1 %v104_v12 }
   0xd   :  { %362 = vmatprep.subr.mxu0 %v442_v1  ;;  %345 = vmatprep.subr.mxu1 %v442_v1  ;;  %p386_p4 = pnand %p385_p3, %p379_p0 }
   0xe   :  { %363 = vmatpush3.msra.mxu0 %v187_v13  ;;  %346 = vmatpush3.msra.mxu1 %v103_v14 }
   0xf   :  { %364 = vmatprep.subr.mxu0 %v442_v1  ;;  %347 = vmatprep.subr.mxu1 %v442_v1 }
  0x10   :  { %365 = vmatpush3.msra.mxu0 %v186_v15  ;;  %348 = vmatpush3.msra.mxu1 %v102_v16 }
  0x11   :  { %366 = vmatprep.subr.mxu0 %v442_v1  ;;  %349 = vmatprep.subr.mxu1 %v442_v1 }
  0x12   :  { %367 = vmatpush3.msra.mxu0 %v185_v17  ;;  %351 = vmatprep.mubr.msk.f32.mxu1 %vm443_vm0, %v442_v1 }
  0x13   :  { %368 = vmatprep.subr.mxu0 %v442_v1  ;;  %370 = vmatprep.mubr.msk.f32.mxu0 %vm443_vm0, %v442_v1 }
  0x14   :  { %350 = vmatpush3.msra.mxu1 %v101_v18  ;;  %369 = vmatpush3.msra.mxu0 %v184_v19 }
  0xc5   :  { %v95_v20 = vpop.f32.mrf.mxu0 }
  0xc6   :  { %352 = vmatmul.mubr.msk.f32.vlgmr.msra.gmra.mxu1 %vm99_vm2, %v95_v20  ;;  %100 = vst.msk [vmem:[#allocation2] sm:$0xff] %vm99_vm2, %v95_v20  ;;  %371 = vmatmul.mubr.msk.f32.vlgmr.msra.gmra.mxu0 %vm99_vm2, %v95_v20 }
  0xc7   :  { %v334_v21 = vpop.f32.mrf.mxu0 }
  0xc8   :  { %389 = shalt.err (!%p386_p4)
}
  0xc9   :  { %272 = dma.vmem_to_hbm [thread:$0]  %s270_s9, 128, %s555_s4, [#allocation3]   ;;  %vm182_vm3 = vcmask 64512  }
  0xca   :  { %s445_s10 = smov [#allocation4]   ;;  %s446_s12 = smov [#allocation6]  }
  0xcb   :  { %s279_s11 = sshll.u32 %s445_s10, 4  ;;  %s289_s13 = sshll.u32 %s446_s12, 4  ;;  %s280_s11 = int_to_ptr.vmem [resolvable:$true] %s279_s11  ;;  %s290_s13 = int_to_ptr.vmem [resolvable:$true] %s289_s13 }
  0xcc   :  { %s398_s14 = scalar_lea.vmem %s280_s11, 128  ;;  %p403_p6 = scmp.lt.s32.totalorder %s280_s11, %s280_s11 }
  0xcd   :  { %p399_p5 = scmp.ne.s32.totalorder %s280_s11, %s398_s14  ;;  %p404_p7 = scmp.lt.s32.totalorder %s398_s14, %s398_s14 }
  0xcf   :  { %p405_p8 = por %p404_p7, %p403_p6 }
  0xd1   :  { %p406_p9 = pnand %p405_p8, %p399_p5 }
 0x186   :  { %v178_v22 = vpop.f32.mrf.mxu1  ;;  %v258_v23 = vpop.f32.mrf.mxu0 }
 0x187   :  { %183 = vst.msk [vmem:[#allocation4] sm:$0xff] %vm182_vm3, %v178_v22  ;;  %262 = vst.msk [vmem:[#allocation6] sm:$0xff] %vm182_vm3, %v258_v23 }
 0x188   :  { %v353_v24 = vpop.f32.mrf.mxu1  ;;  %v372_v25 = vpop.f32.mrf.mxu0 }
 0x189   :  { %409 = shalt.err (!%p406_p9)
}
 0x18a   :  { %282 = dma.vmem_to_hbm [thread:$0]  %s280_s11, 128, %s556_s5, [#allocation5]  }
 0x18b   :  { %s418_s16 = scalar_lea.vmem %s290_s13, 128  ;;  %p423_p11 = scmp.lt.s32.totalorder %s290_s13, %s290_s13 }
 0x18c   :  { %p419_p10 = scmp.ne.s32.totalorder %s290_s13, %s418_s16  ;;  %p424_p12 = scmp.lt.s32.totalorder %s418_s16, %s418_s16 }
 0x18e   :  { %p425_p13 = por %p424_p12, %p423_p11 }
 0x190   :  { %p426_p0 = pnand %p425_p13, %p419_p10 }
 0x192   :  { %429 = shalt.err (!%p426_p0)
}
 0x193   :  { %292 = dma.vmem_to_hbm [thread:$0]  %s290_s13, 128, %s557_s6, [#allocation5]  }
 0x194   :  { %438 = dma.done.wait [#allocation3], 128  }
 0x195   :  { %439 = vsyncadd [#allocation3], 4294967168 }
 0x196   :  { %440 = dma.done.wait [#allocation5], 256  }
 0x197   :  { %441 = vsyncadd [#allocation5], 4294967040 }
 0x198   :  { %302 = vsyncpa [#allocation3], 1 }
 0x199   :  { %303 = vsyncpa [#allocation5], 1 }

</bundles_post_ra>
